<compile_context>
chip_gen: v6e
topology: v6e:2x2x1
jax: 0.10.0
libtpu: 0.0.40
codegen_flags: <defaults>
</compile_context>

<pallas_src>
import functools

import jax
import jax.numpy as jnp
from jax.experimental import pallas as pl
from jax.experimental.pallas import tpu as pltpu

# Safe on all generations: v5e/v6e have 128 MiB physical VMEM, v7x has 64 MiB
# per TensorCore; 32 MiB leaves headroom for compiler-internal scratch.
_VMEM_LIMIT_BYTES = 32 * 1024 * 1024


def _silu_smearing_nk_kernel(dist_ref, wc_ref, out_ref):
    # dist_ref: (TN, 1); wc_ref: (2, K) [row0 = 0.5*W[:,0], row1 = 0.5*(W[:,1]+b)]
    # out_ref : (TN, K)
    d = dist_ref[...]                   # (TN, 1)
    w0 = wc_ref[0:1, :]                 # (1, K)
    c = wc_ref[1:2, :]                  # (1, K)
    h = d * w0 + c                      # h = z/2, broadcast to (TN, K)
    # SiLU(z) = z*sigmoid(z) = h*(1 + tanh(h)): single EUP op per element.
    # NOTE: on the ragged boundary block the out-of-range rows hold garbage
    # (possibly NaN); tanh of garbage is fine because Pallas masks those
    # writes off — do not "fix" this with an explicit mask.
    out_ref[...] = (h + h * jnp.tanh(h)).astype(out_ref.dtype)


def _silu_smearing_kn_kernel(dist_ref, wc_ref, out_ref):
    # Lane-dense fast path: dist_ref (1, TN); wc_ref (K, 2); out_ref (K, TN).
    # dist broadcasts along sublanes (cheap); output stores are unmasked,
    # full 128-lane vst.
    d = dist_ref[...]                   # (1, TN)
    w0 = wc_ref[:, 0:1]                 # (K, 1)
    c = wc_ref[:, 1:2]                  # (K, 1)
    h = w0 * d + c                      # (K, TN), h = z/2
    out_ref[...] = (h + h * jnp.tanh(h)).astype(out_ref.dtype)


def _round_up(x, m):
    return ((x + m - 1) // m) * m


def _pick_tile(n, tile_n, align, min_steps):
    """Clamp the tile so the grid has >= min_steps steps when N allows.

    Guarantees the ("parallel",) grid axis actually has work to shard across
    v7x's two TensorCores (and gives the pipeline something to overlap),
    while never dropping below one aligned tile.
    """
    cap = max(align, _round_up(pl.cdiv(n, min_steps), align))
    return max(align, min(_round_up(tile_n, align), cap))


@functools.partial(
    jax.jit, static_argnames=("tile_n", "transposed_output", "out_dtype"))
def silu_smearing(dist, weight, bias, *, tile_n=None, transposed_output=False,
                  out_dtype=jnp.float32):
    """SiLU(Linear(2, K)([dist, 1])).

    dist:   any-shape float array (flattened to N rows).
    weight: (num_output, 2) — nn.Linear(2, num_output).weight
    bias:   (num_output,)   — nn.Linear(2, num_output).bias

    Returns (N, num_output) by default (module semantics; pays masked
    narrow-lane stores). transposed_output=True returns (num_output, N) with
    lane-dense, unmasked stores — prefer it when the consumer can take the
    transposed layout. out_dtype=jnp.bfloat16 halves HBM write bytes for this
    write-bound kernel (precision tradeoff vs. the f32 reference).
    """
    num_output = weight.shape[0]
    w = weight.astype(jnp.float32)
    b = bias.astype(jnp.float32)

    # Fold the bias and the SiLU 1/2 factor into the parameters:
    #   z = d*W[:,0] + (W[:,1] + b)   ->   h = z/2 = d*w0h + ch
    w0h = 0.5 * w[:, 0]                 # (K,)
    ch = 0.5 * (w[:, 1] + b)            # (K,)

    d_flat = dist.reshape(-1).astype(jnp.float32)
    n = d_flat.shape[0]

    out_itemsize = jnp.dtype(out_dtype).itemsize
    cost = pl.CostEstimate(
        flops=4 * n * num_output,
        transcendentals=n * num_output,
        bytes_accessed=4 * n + out_itemsize * n * num_output + 8 * num_output,
    )
    cparams = pltpu.CompilerParams(
        dimension_semantics=("parallel",),
        vmem_limit_bytes=_VMEM_LIMIT_BYTES,
    )

    if transposed_output:
        # Lane-dense fast path: output (K, N), lane axis = N.
        # Per-buffer VMEM at tn=16384 (f32 out): out ~3.7 MiB, dist ~0.5 MiB;
        # double-buffered ~8.3 MiB total — fits every generation's scoped
        # default with room to spare.
        # TODO(synk): on v7x, consider pipeline_mode=pl.Buffered(3) on the
        # (tiny) dist input if DMA latency is exposed at 3.2 TB/s HBM.
        tn = _pick_tile(n, 16384 if tile_n is None else tile_n, 128, 4)
        params = jnp.stack([w0h, ch], axis=1)            # (K, 2)
        d2 = d_flat.reshape(1, n)
        return pl.pallas_call(
            _silu_smearing_kn_kernel,
            out_shape=jax.ShapeDtypeStruct((num_output, n), out_dtype),
            grid=(pl.cdiv(n, tn),),
            in_specs=[
                pl.BlockSpec((1, tn), lambda i: (0, i)),
                pl.BlockSpec((num_output, 2), lambda i: (0, 0)),
            ],
            out_specs=pl.BlockSpec((num_output, tn), lambda i: (0, i)),
            compiler_params=cparams,
            cost_estimate=cost,
        )(d2, params)

    # Default layout (N, K), matching the PyTorch module's output.
    # Per-buffer VMEM at tn=2048 (f32): dist (2048,1)->(2048,128) = 1 MiB and
    # out (2048,50)->(2048,128) = 1 MiB (both 128-lane padded); ~4 MiB total
    # double-buffered. Larger tiles buy little here — the masked 50-lane
    # stores, not DMA, are the saturated slot.
    tn = _pick_tile(n, 2048 if tile_n is None else tile_n, 8, 4)
    params = jnp.stack([w0h, ch], axis=0)                # (2, K)
    d2 = d_flat.reshape(n, 1)
    return pl.pallas_call(
        _silu_smearing_nk_kernel,
        out_shape=jax.ShapeDtypeStruct((n, num_output), out_dtype),
        grid=(pl.cdiv(n, tn),),
        in_specs=[
            pl.BlockSpec((tn, 1), lambda i: (i, 0)),
            pl.BlockSpec((2, num_output), lambda i: (0, 0)),
        ],
        out_specs=pl.BlockSpec((tn, num_output), lambda i: (i, 0)),
        compiler_params=cparams,
        cost_estimate=cost,
    )(d2, params)


def _reference(dist, weight, bias):
    x = dist.reshape(-1, 1).astype(jnp.float32)
    x = jnp.concatenate([x, jnp.ones_like(x)], axis=1)   # (N, 2)
    z = x @ weight.T.astype(jnp.float32) + bias.astype(jnp.float32)
    return z * jax.nn.sigmoid(z)


if __name__ == "__main__":
    num_output = 50

    key = jax.random.PRNGKey(0)
    k_w, k_b, k_d1, k_d2 = jax.random.split(key, 4)

    # nn.Linear(2, num_output) init shapes: weight (K, 2), bias (K,),
    # U(-1/sqrt(2), 1/sqrt(2)).
    bound = 1.0 / jnp.sqrt(2.0)
    weight = jax.random.uniform(k_w, (num_output, 2), jnp.float32, -bound, bound)
    bias = jax.random.uniform(k_b, (num_output,), jnp.float32, -bound, bound)

    # Case 1: small distance batch, N = 256 rows, default (N, K) layout.
    dist1 = jax.random.uniform(k_d1, (2, 128), jnp.float32, 0.0, 5.0)
    out1 = jax.block_until_ready(silu_smearing(dist1, weight, bias))
    ref1 = _reference(dist1, weight, bias)
    assert out1.shape == (dist1.size, num_output), out1.shape
    assert jnp.allclose(out1, ref1, atol=1e-4, rtol=1e-5), float(
        jnp.max(jnp.abs(out1 - ref1)))

    # Case 2: ragged N (not a multiple of 8/128) — no pad/slice round trip.
    dist2 = jax.random.uniform(k_d2, (134,), jnp.float32, 0.0, 5.0)
    out2 = jax.block_until_ready(silu_smearing(dist2, weight, bias))
    ref2 = _reference(dist2, weight, bias)
    assert out2.shape == (134, num_output), out2.shape
    assert jnp.allclose(out2, ref2, atol=1e-4, rtol=1e-5), float(
        jnp.max(jnp.abs(out2 - ref2)))

    # Case 3: lane-dense transposed fast path.
    out3 = jax.block_until_ready(
        silu_smearing(dist1, weight, bias, transposed_output=True))
    assert out3.shape == (num_output, dist1.size), out3.shape
    assert jnp.allclose(out3.T, ref1, atol=1e-4, rtol=1e-5), float(
        jnp.max(jnp.abs(out3.T - ref1)))

    # Case 4: ragged N on the lane-dense path + bf16 output option.
    out4 = jax.block_until_ready(
        silu_smearing(dist2, weight, bias, transposed_output=True,
                      out_dtype=jnp.bfloat16))
    assert out4.shape == (num_output, 134), out4.shape
    assert jnp.allclose(out4.T.astype(jnp.float32), ref2, atol=2e-2,
                        rtol=2e-2), float(
        jnp.max(jnp.abs(out4.T.astype(jnp.float32) - ref2)))

    print("KERNEL_OK")
</pallas_src>

<mosaic_0001>
module attributes {stable_mosaic.version = 11 : i64} {
  func.func @_silu_smearing_nk_kernel(%arg0: i32, %arg1: memref<64x1xf32, #tpu.memory_space<vmem>>, %arg2: memref<2x50xf32, #tpu.memory_space<vmem>>, %arg3: memref<64x50xf32, #tpu.memory_space<vmem>>) attributes {dimension_semantics = [#tpu.dimension_semantics<parallel>], iteration_bounds = array<i64: 4>, scalar_prefetch = 0 : i64, scratch_operands = 0 : i64, tpu.core_type = #tpu.core_type<tc>, window_params = [{transform_indices = @transform_0, window_bounds = array<i64: 64, 1>}, {pipeline_mode = #tpu.pipeline_mode<synchronous>, transform_indices = @transform_1, window_bounds = array<i64: 2, 50>}, {transform_indices = @transform_2, window_bounds = array<i64: 64, 50>}]} {
    %c0 = arith.constant 0 : index
    %c0_0 = arith.constant 0 : index
    %0 = vector.load %arg1[%c0, %c0_0] : memref<64x1xf32, #tpu.memory_space<vmem>>, vector<64x1xf32>
    %c0_1 = arith.constant 0 : index
    %c0_2 = arith.constant 0 : index
    %1 = vector.load %arg2[%c0_1, %c0_2] : memref<2x50xf32, #tpu.memory_space<vmem>>, vector<1x50xf32>
    %c1 = arith.constant 1 : index
    %c0_3 = arith.constant 0 : index
    %2 = vector.load %arg2[%c1, %c0_3] : memref<2x50xf32, #tpu.memory_space<vmem>>, vector<1x50xf32>
    %3 = vector.broadcast %0 : vector<64x1xf32> to vector<64x50xf32>
    %4 = vector.broadcast %1 : vector<1x50xf32> to vector<64x50xf32>
    %5 = arith.mulf %3, %4 : vector<64x50xf32>
    %6 = vector.broadcast %2 : vector<1x50xf32> to vector<64x50xf32>
    %7 = arith.addf %5, %6 : vector<64x50xf32>
    %8 = math.tanh %7 : vector<64x50xf32>
    %9 = arith.mulf %7, %8 : vector<64x50xf32>
    %10 = arith.addf %7, %9 : vector<64x50xf32>
    %c0_4 = arith.constant 0 : index
    %c0_5 = arith.constant 0 : index
    %11 = vector.load %arg3[%c0_4, %c0_5] : memref<64x50xf32, #tpu.memory_space<vmem>>, vector<64x50xf32>
    tpu.vector_store %arg3[%c0_4, %c0_5], %10 {strides = array<i32>} : memref<64x50xf32, #tpu.memory_space<vmem>>, vector<64x50xf32>,
    return
  }
  func.func @transform_0(%arg0: i32) -> (i32, i32) {
    %c0_i32 = arith.constant 0 : i32
    %c0_i32_0 = arith.constant 0 : i32
    return %arg0, %c0_i32 : i32, i32
  }
  func.func @transform_1(%arg0: i32) -> (i32, i32) {
    %c0_i32 = arith.constant 0 : i32
    %c0_i32_0 = arith.constant 0 : i32
    %c0_i32_1 = arith.constant 0 : i32
    return %c0_i32, %c0_i32_0 : i32, i32
  }
  func.func @transform_2(%arg0: i32) -> (i32, i32) {
    %c0_i32 = arith.constant 0 : i32
    %c0_i32_0 = arith.constant 0 : i32
    return %arg0, %c0_i32 : i32, i32
  }
}

</mosaic_0001>

<bundles_post_ra>
// kernel: silu_smearing.1
= control target key start
LH: loop header
LB: loop body
LE: loop exit
PB: predicated region body
PF: predicated region fallthrough
CT: control target
= control target key end

     0   :  { %s374_s9 = smov 0   ;;  %s412_s0 = inlined_call_operand.vmem [shape: f32[256,1], index: 0, kind: input, shape index: {}]   ;;  %s413_s1 = inlined_call_operand.vmem [shape: f32[2,50], index: 1, kind: input, shape index: {}]   ;;  %s414_s2 = inlined_call_operand.vmem [shape: f32[256,50], index: 2, kind: output, shape index: {}]  }
   0x1 LB: > { %s310_s10 = sadd.s32 4294967295, %s356_s9   ;;  %p314_p0 = scmp.ge.s32.totalorder %s356_s9, 1  ;;  %s356_s9 = sphi %s374_s9, %s12_s9  }
   0x2   : > { %p113_p1 = scmp.lt.s32.totalorder %s356_s9, 5 }
   0x4   : > { %p114_p2 = pnand %p314_p0, %p113_p1 }
   0x5   : > { %s315_s11 = sshll.u32 (!%p114_p2), %s310_s10, 3 }
   0x6   : > { %117 = sbr.rel (%p114_p2) target bundleno = 175 (0xaf), region = 28  ;;  %p136_p3 = scmp.lt.s32.totalorder (!%p114_p2), %s315_s11, 31 }
   0xb   : > { %v358_v0 = vmov 0   ;;  %s416_s11 = smov (!%p136_p3, %s315_s11), 31  ;;  %v319_v9 = vld [vmem:[%s413_s1] ss:$0 sm:$0xff]  ;;  %v320_v10 = vld [vmem:[%s413_s1 + $0x1] ss:$0 sm:$0xff] }
   0xc   : > { %333 = vset.pattern.permute.xlu1 %v358_v0  ;;  %332 = vset.pattern.permute.xlu0 %v358_v0  ;;  %s316_s12 = sshll.u32 %s416_s11, 3  ;;  %vm245_vm0 = vcmask 408576  }
   0xd   : > { %s139_s15 = scalar_lea.vmem %s412_s0, %s316_s12  ;;  %s145_s22 = scalar_lea.vmem %s414_s2, %s316_s12 }
   0xe   : > { %v149_v1 = vld [vmem:[%s139_s15 + $0x10] sm:$0xff]  ;;  %v147_v2 = vld [vmem:[%s139_s15] sm:$0xff]  ;;  %v150_v3 = vld [vmem:[%s139_s15 + $0x18] sm:$0xff] }
   0xf   : > { %169 = vperm.xlu1 %333, %v149_v1   ;;  %159 = vperm.xlu0 %332, %v147_v2   ;;  %v148_v4 = vld [vmem:[%s139_s15 + $0x8] sm:$0xff]  ;;  %v151_v6 = vld [vmem:[%s139_s15 + $0x20] sm:$0xff]  ;;  %v154_v7 = vld [vmem:[%s139_s15 + $0x38] sm:$0xff] }
  0x10   : > { %v152_v5 = vld [vmem:[%s139_s15 + $0x28] sm:$0xff]  ;;  %v153_v8 = vld [vmem:[%s139_s15 + $0x30] sm:$0xff] }
  0x13   : > { %174 = vperm.xlu1 %333, %v150_v3   ;;  %164 = vperm.xlu0 %332, %v148_v4  }
  0x17   : > { %184 = vperm.xlu1 %333, %v152_v5   ;;  %179 = vperm.xlu0 %332, %v151_v6  }
  0x1b   : > { %194 = vperm.xlu1 %333, %v154_v7   ;;  %189 = vperm.xlu0 %332, %v153_v8  }
  0x8a   : > { %v170_v11 = vpop.permute.xlu1 %169  ;;  %v160_v12 = vpop.permute.xlu0 %159 }
  0x8b   : > { %v203_v13 = vmul.f32 %v319_v9, %v170_v11  ;;  %v201_v14 = vmul.f32 %v319_v9, %v160_v12 }
  0x8d   : > { %v215_v15 = vadd.f32 %v320_v10, %v203_v13  ;;  %v213_v16 = vadd.f32 %v320_v10, %v201_v14 }
  0x8e   : > { %v175_v17 = vpop.permute.xlu1 %174  ;;  %v165_v18 = vpop.permute.xlu0 %164 }
  0x8f   : > { %334 = vtanh.f32 %v215_v15  ;;  %v204_v19 = vmul.f32 %v319_v9, %v175_v17  ;;  %v202_v20 = vmul.f32 %v319_v9, %v165_v18 }
  0x90   : > { %336 = vtanh.f32 %v213_v16 }
  0x91   : > { %v216_v21 = vadd.f32 %v320_v10, %v204_v19  ;;  %v214_v22 = vadd.f32 %v320_v10, %v202_v20 }
  0x92   : > { %v185_v23 = vpop.permute.xlu1 %184  ;;  %v180_v24 = vpop.permute.xlu0 %179 }
  0x93   : > { %338 = vtanh.f32 %v216_v21  ;;  %v206_v25 = vmul.f32 %v319_v9, %v185_v23  ;;  %v205_v26 = vmul.f32 %v319_v9, %v180_v24 }
  0x94   : > { %340 = vtanh.f32 %v214_v22 }
  0x95   : > { %v218_v27 = vadd.f32 %v320_v10, %v206_v25  ;;  %v217_v28 = vadd.f32 %v320_v10, %v205_v26 }
  0x96   : > { %v195_v29 = vpop.permute.xlu1 %194  ;;  %v190_v30 = vpop.permute.xlu0 %189 }
  0x97   : > { %342 = vtanh.f32 %v218_v27  ;;  %v208_v31 = vmul.f32 %v319_v9, %v195_v29  ;;  %v207_v32 = vmul.f32 %v319_v9, %v190_v30 }
  0x98   : > { %344 = vtanh.f32 %v217_v28 }
  0x99   : > { %v220_v33 = vadd.f32 %v320_v10, %v208_v31  ;;  %v219_v34 = vadd.f32 %v320_v10, %v207_v32 }
  0x9b   : > { %346 = vtanh.f32 %v220_v33 }
  0x9c   : > { %v335_v35 = vpop.eup %334  ;;  %348 = vtanh.f32 %v219_v34 }
  0x9d   : > { %v337_v36 = vpop.eup %336  ;;  %v231_v37 = vmul.f32 %v335_v35, %v215_v15 }
  0x9e   : > { %v229_v38 = vmul.f32 %v337_v36, %v213_v16 }
  0x9f   : > { %v239_v39 = vadd.f32 %v231_v37, %v215_v15 }
  0xa0   : > { %v339_v40 = vpop.eup %338  ;;  %v237_v41 = vadd.f32 %v229_v38, %v213_v16 }
  0xa1   : > { %v341_v42 = vpop.eup %340  ;;  %248 = vst.msk [vmem:[%s145_s22 + $0x10] sm:$0xff] %vm245_vm0, %v239_v39  ;;  %v232_v43 = vmul.f32 %v339_v40, %v216_v21 }
  0xa2   : > { %246 = vst.msk [vmem:[%s145_s22] sm:$0xff] %vm245_vm0, %v237_v41  ;;  %v230_v44 = vmul.f32 %v341_v42, %v214_v22 }
  0xa3   : > { %v240_v45 = vadd.f32 %v232_v43, %v216_v21 }
  0xa4   : > { %v343_v46 = vpop.eup %342  ;;  %v238_v47 = vadd.f32 %v230_v44, %v214_v22 }
  0xa5   : > { %v345_v48 = vpop.eup %344  ;;  %249 = vst.msk [vmem:[%s145_s22 + $0x18] sm:$0xff] %vm245_vm0, %v240_v45  ;;  %v234_v49 = vmul.f32 %v343_v46, %v218_v27 }
  0xa6   : > { %247 = vst.msk [vmem:[%s145_s22 + $0x8] sm:$0xff] %vm245_vm0, %v238_v47  ;;  %v233_v50 = vmul.f32 %v345_v48, %v217_v28 }
  0xa7   : > { %v242_v51 = vadd.f32 %v234_v49, %v218_v27 }
  0xa8   : > { %v347_v52 = vpop.eup %346  ;;  %v241_v53 = vadd.f32 %v233_v50, %v217_v28 }
  0xa9   : > { %v349_v54 = vpop.eup %348  ;;  %251 = vst.msk [vmem:[%s145_s22 + $0x28] sm:$0xff] %vm245_vm0, %v242_v51  ;;  %v236_v55 = vmul.f32 %v347_v52, %v220_v33 }
  0xaa   : > { %250 = vst.msk [vmem:[%s145_s22 + $0x20] sm:$0xff] %vm245_vm0, %v241_v53  ;;  %v235_v56 = vmul.f32 %v349_v54, %v219_v34 }
  0xab   : > { %v244_v57 = vadd.f32 %v236_v55, %v220_v33 }
  0xac   : > { %v243_v58 = vadd.f32 %v235_v56, %v219_v34 }
  0xad   : > { %253 = vst.msk [vmem:[%s145_s22 + $0x38] sm:$0xff] %vm245_vm0, %v244_v57 }
  0xae   : > { %252 = vst.msk [vmem:[%s145_s22 + $0x30] sm:$0xff] %vm245_vm0, %v243_v58 }
  0xaf PF: > { %s12_s9 = sadd.s32 1, %s356_s9  }
  0xb0   : > { %p9_p4 = scmp.ge.s32.totalorder %s12_s9, 6  }
  0xb2   :  { %11 = sbr.rel (!%p9_p4) target bundleno = 1 (0x1), region = 58 }

</bundles_post_ra>
